<compile_context>
chip_gen: v7x
topology: tpu7x:2x2x1
jax: 0.10.0
libtpu: 0.0.40
codegen_flags: <defaults>
</compile_context>

<pallas_src>
import math

import jax
import jax.numpy as jnp
from jax.experimental import pallas as pl
from jax.experimental.pallas import tpu as pltpu

# ---- problem sizes (small, consistent with the module) ----------------------
N_NODES = 16            # number of graph nodes
F_IN = 16               # n_source_nodes  (input feature dim)
F_OUT = 32              # n_target_nodes  (output feature dim)
HEADS = 4
C = F_OUT // HEADS      # per-head channels
N_EDGES = 3 * N_NODES   # deterministic example graphs: 3 in-edges per node
GN_EPS = 1e-5           # GraphNorm eps
MM_EPS = 1e-8           # min-max scale eps

LANES = 128
# per-graph input slab layout ([GRAPH_ROWS, 128] f32)
ROW_SRC = N_NODES       # 16 : src node ids (as exact floats), lanes 0..E-1
ROW_DST = N_NODES + 1   # 17 : dst node ids
ROW_EA = N_NODES + 2    # 18 : edge attributes
GRAPH_ROWS = 24         # 19 used rows padded to a multiple of 8
# shared parameter slab layout ([SHARED_ROWS, 128] f32)
ROW_BIAS = F_IN         # 16 : bq|bk|bv|bskip
ROW_PAR = F_IN + 1      # 17 : we|gn_w|gn_b|gn_ms
BM_ROW0 = 24            # 24..24+H*N-1 : per-head block mask (lanes 0..F_OUT-1)
SHARED_ROWS = BM_ROW0 + HEADS * N_NODES   # 88

_NEG_BIG = -1e30
_DN_T0 = (((0,), (0,)), ((), ()))   # dot_general dims: contract axis 0 of both (A^T B)
_DN_T1 = (((1,), (1,)), ((), ()))   # dot_general dims: contract axis 1 of both (A B^T)


# ---- Pallas kernel (one grid step == one graph) ------------------------------
def la_kernel(g_ref, w_ref, o_ref):
    f32, bf16 = jnp.float32, jnp.bfloat16
    n, nh, c = N_NODES, HEADS, C

    # ---- unpack the two slabs ------------------------------------------------
    g = g_ref[0]                                        # [GRAPH_ROWS, 128]
    x = g[0:n, 0:F_IN]                                  # [N, F_IN]
    srcf = g[ROW_SRC:ROW_SRC + 1, 0:N_EDGES]            # [1, E] exact float ids
    dstf = g[ROW_DST:ROW_DST + 1, 0:N_EDGES]            # [1, E]
    eaf = g[ROW_EA:ROW_EA + 1, 0:N_EDGES]               # [1, E]

    w_all = w_ref[0:F_IN, :]                            # [F_IN, 4*F_OUT] wq|wk|wv|wskip
    b_all = w_ref[ROW_BIAS:ROW_BIAS + 1, :]             # [1, 4*F_OUT]
    prow = w_ref[ROW_PAR:ROW_PAR + 1, :]                # [1, 128]
    we = prow[:, 0:F_OUT]                               # lin_edge weight
    gn_w = prow[:, F_OUT:2 * F_OUT]                     # GraphNorm weight
    gn_b = prow[:, 2 * F_OUT:3 * F_OUT]                 # GraphNorm bias
    gn_ms = prow[:, 3 * F_OUT:4 * F_OUT]                # GraphNorm mean_scale
    blockmask = w_ref[BM_ROW0:BM_ROW0 + nh * n, 0:F_OUT]  # [H*N, F_OUT] (hoisted const)

    # ---- densify the graph in-kernel (one-hot compares + 2 tiny matmuls) -----
    # src_oh[i, e] = 1 iff src[e] == i  (node index on sublanes, edges on lanes)
    niota = jax.lax.broadcasted_iota(jnp.int32, (n, N_EDGES), 0).astype(f32)
    src_oh = (niota == srcf).astype(f32)                # [N, E]
    dst_oh = (niota == dstf).astype(f32)                # [N, E]
    adj = jax.lax.dot_general(dst_oh, src_oh, _DN_T1,
                              preferred_element_type=f32)        # [N, N]  adj[dst, src]
    ea = jax.lax.dot_general(dst_oh, src_oh * eaf, _DN_T1,
                             preferred_element_type=f32)         # [N, N]

    # ---- fused q|k|v|skip projection (bf16 operands, f32 accumulation) -------
    proj = jnp.dot(x.astype(bf16), w_all.astype(bf16),
                   preferred_element_type=f32) + b_all           # [N, 4*F_OUT]
    q = proj[:, 0:F_OUT]
    k = proj[:, F_OUT:2 * F_OUT]
    v = proj[:, 2 * F_OUT:3 * F_OUT]
    skip = proj[:, 3 * F_OUT:4 * F_OUT]

    # ---- head-batched attention: heads stacked on the sublane axis -----------
    def rep(a):  # [R, L] -> [H*R, L] via broadcast + reshape (no concatenate)
        return jnp.broadcast_to(a[None], (nh,) + a.shape).reshape(
            nh * a.shape[0], a.shape[1])

    qb = rep(q) * blockmask                              # [H*N, F_OUT] own-head cols
    adj_r = rep(adj)                                     # [H*N, N]
    ea_r = rep(ea)                                       # [H*N, N]

    # all-head scores in ONE MXU pass (kept f32 for softmax accuracy)
    qk = jax.lax.dot_general(qb, k, _DN_T1, preferred_element_type=f32)  # [H*N, N]
    qe = jnp.sum(qb * we, axis=1, keepdims=True)                         # [H*N, 1]
    alpha = (qk + ea_r * qe) * (1.0 / math.sqrt(c))

    # ONE masked softmax over incoming edges (lane axis) for all heads
    mask = adj_r > 0.0
    m = jnp.max(jnp.where(mask, alpha, _NEG_BIG), axis=1, keepdims=True)
    p = jnp.exp(jnp.where(mask, alpha - m, _NEG_BIG))    # clamped: never produces inf
    attn = p / (jnp.sum(p, axis=1, keepdims=True) + 1e-16)          # [H*N, N]

    # all-head aggregation in ONE MXU pass, fold heads back via reshape + sum
    av = jnp.dot(attn.astype(bf16), v.astype(bf16),
                 preferred_element_type=f32)                        # [H*N, F_OUT]
    ae = jnp.sum(attn * ea_r, axis=1, keepdims=True)                # [H*N, 1]
    contrib = (av + ae * we) * blockmask                            # own-head cols
    out = jnp.sum(contrib.reshape(nh, n, F_OUT), axis=0) + skip     # [N, F_OUT]

    # ---- GraphNorm (per graph) + ReLU -----------------------------------------
    mean = jnp.mean(out, axis=0, keepdims=True)
    centered = out - mean * gn_ms
    var = jnp.mean(centered * centered, axis=0, keepdims=True)
    hfeat = gn_w * centered * jax.lax.rsqrt(var + GN_EPS) + gn_b
    hfeat = jnp.maximum(hfeat, 0.0)

    # ---- Gram matrix + global min-max scale (f32) ------------------------------
    xt = jax.lax.dot_general(hfeat, hfeat, _DN_T0,
                             preferred_element_type=f32)            # [F_OUT, F_OUT]
    xt_min = jnp.min(xt)
    xt_max = jnp.max(xt)
    xt = (xt - xt_min) / (xt_max - xt_min + MM_EPS)
    # TODO(synk): multi_dim_edge / binarize branches not implemented (ctor defaults are False).
    o_ref[0] = xt


# ---- wrapper -----------------------------------------------------------------
def _pack_graph(x, edge_index, edge_attr):
    """Pack one graph's x / src / dst / edge_attr into a lane-dense [24,128] slab."""
    slab = jnp.zeros((GRAPH_ROWS, LANES), jnp.float32)
    slab = slab.at[0:N_NODES, 0:F_IN].set(x)
    slab = slab.at[ROW_SRC, 0:N_EDGES].set(edge_index[0].astype(jnp.float32))
    slab = slab.at[ROW_DST, 0:N_EDGES].set(edge_index[1].astype(jnp.float32))
    slab = slab.at[ROW_EA, 0:N_EDGES].set(edge_attr[:, 0])
    return slab


def _pack_shared(params):
    """Pack all weights/biases/GraphNorm params + the per-head block mask into [88,128]."""
    w_all = jnp.concatenate([params["wq"], params["wk"],
                             params["wv"], params["wskip"]], axis=1)   # [F_IN, 128]
    b_all = jnp.concatenate([params["bq"], params["bk"],
                             params["bv"], params["bskip"]], axis=1)   # [1, 128]
    prow = jnp.concatenate([params["we"], params["gn_w"],
                            params["gn_b"], params["gn_ms"]], axis=1)  # [1, 128]
    # blockmask[h*N + i, h'*C + j] = 1 iff h == h'   (hoisted per-step constant)
    row_h = jnp.arange(HEADS * N_NODES, dtype=jnp.int32)[:, None] // N_NODES
    col_h = jnp.arange(F_OUT, dtype=jnp.int32)[None, :] // C
    blockmask = (row_h == col_h).astype(jnp.float32)                   # [H*N, F_OUT]

    slab = jnp.zeros((SHARED_ROWS, LANES), jnp.float32)
    slab = slab.at[0:F_IN, :].set(w_all)
    slab = slab.at[ROW_BIAS, :].set(b_all[0])
    slab = slab.at[ROW_PAR, :].set(prow[0])
    slab = slab.at[BM_ROW0:BM_ROW0 + HEADS * N_NODES, 0:F_OUT].set(blockmask)
    return slab


@jax.jit
def la_forward(xs, edge_indices, edge_attrs, params):
    """Batched LA forward.

    xs:           [B, N, F_IN]  float32
    edge_indices: [B, 2, E]     int32  (row0=src, row1=dst), duplicate-free
    edge_attrs:   [B, E, 1]     float32
    returns       [B, F_OUT, F_OUT]
    """
    b = xs.shape[0]
    graphs = jax.vmap(_pack_graph)(xs, edge_indices, edge_attrs)   # [B, 24, 128]
    shared = _pack_shared(params)                                  # [88, 128]

    cost = pl.CostEstimate(
        flops=b * 400_000,
        transcendentals=b * 1_200,
        bytes_accessed=b * (GRAPH_ROWS * LANES * 4 + F_OUT * F_OUT * 4)
        + SHARED_ROWS * LANES * 4,
    )

    # TODO(synk): if DMA latency still shows after batching, bump the per-graph
    # slab to pipeline_mode=pl.Buffered(3) (VMEM headroom is enormous here).
    return pl.pallas_call(
        la_kernel,
        out_shape=jax.ShapeDtypeStruct((b, F_OUT, F_OUT), jnp.float32),
        grid=(b,),
        in_specs=[
            pl.BlockSpec((1, GRAPH_ROWS, LANES), lambda i: (i, 0, 0)),
            pl.BlockSpec((SHARED_ROWS, LANES), lambda i: (0, 0)),   # grid-invariant
        ],
        out_specs=pl.BlockSpec((1, F_OUT, F_OUT), lambda i: (i, 0, 0)),
        compiler_params=pltpu.CompilerParams(
            dimension_semantics=("parallel",)),      # v7x: batch split across 2 TCs
        cost_estimate=cost,
    )(graphs, shared)


# ---- pure-JAX reference (original per-head formulation, no Pallas) -----------
def la_reference(x, edge_index, edge_attr, params):
    f32 = jnp.float32
    n = x.shape[0]
    adj = jnp.zeros((n, n), f32).at[edge_index[1], edge_index[0]].set(1.0)
    ea = jnp.zeros((n, n), f32).at[edge_index[1], edge_index[0]].set(edge_attr[:, 0])

    q = jnp.dot(x, params["wq"]) + params["bq"]
    k = jnp.dot(x, params["wk"]) + params["bk"]
    v = jnp.dot(x, params["wv"]) + params["bv"]
    skip = jnp.dot(x, params["wskip"]) + params["bskip"]
    we = params["we"]

    inv_sqrt_c = 1.0 / math.sqrt(C)
    outs = []
    for h in range(HEADS):
        sl = slice(h * C, (h + 1) * C)
        q_h, k_h, v_h, we_h = q[:, sl], k[:, sl], v[:, sl], we[:, sl]
        alpha = (jnp.dot(q_h, k_h.T) + ea * jnp.dot(q_h, we_h.T)) * inv_sqrt_c
        alpha = jnp.where(adj > 0.0, alpha, -1e30)
        m = jnp.max(alpha, axis=1, keepdims=True)
        p = jnp.exp(alpha - m) * adj
        attn = p / (jnp.sum(p, axis=1, keepdims=True) + 1e-16)
        ae = jnp.sum(attn * ea, axis=1, keepdims=True)
        outs.append(jnp.dot(attn, v_h) + ae * we_h)
    out = jnp.concatenate(outs, axis=1) + skip

    mean = jnp.mean(out, axis=0, keepdims=True)
    centered = out - mean * params["gn_ms"]
    var = jnp.mean(centered * centered, axis=0, keepdims=True)
    hfeat = params["gn_w"] * centered * jax.lax.rsqrt(var + GN_EPS) + params["gn_b"]
    hfeat = jnp.maximum(hfeat, 0.0)

    xt = hfeat.T @ hfeat
    xt_min = jnp.min(xt)
    xt_max = jnp.max(xt)
    return (xt - xt_min) / (xt_max - xt_min + MM_EPS)


if __name__ == "__main__":
    B = 8
    key = jax.random.PRNGKey(0)
    ks = jax.random.split(key, 12)

    xs = jax.random.normal(ks[0], (B, N_NODES, F_IN), jnp.float32)
    edge_attrs = jax.random.uniform(ks[1], (B, N_EDGES, 1), jnp.float32)

    # Deterministic, duplicate-free directed graphs: in graph b, node i receives
    # edges from i+d (mod N) for three distinct, b-dependent deltas.
    edge_list = []
    for bidx in range(B):
        deltas = (1 + (bidx % 5), 6, 11)
        src, dst = [], []
        for i in range(N_NODES):
            for d in deltas:
                src.append((i + d) % N_NODES)
                dst.append(i)
        assert len(set(zip(src, dst))) == N_EDGES, "duplicate edges"  # dense adj assumption
        edge_list.append([src, dst])
    edge_indices = jnp.array(edge_list, dtype=jnp.int32)             # [B, 2, E]

    def lin_w(k, fan_in, fan_out):
        s = 1.0 / math.sqrt(fan_in)
        return jax.random.uniform(k, (fan_in, fan_out), jnp.float32, -s, s)

    def lin_b(k, fan_out):
        return jax.random.uniform(k, (1, fan_out), jnp.float32, -0.1, 0.1)

    params = dict(
        wq=lin_w(ks[2], F_IN, F_OUT), bq=lin_b(ks[3], F_OUT),
        wk=lin_w(ks[4], F_IN, F_OUT), bk=lin_b(ks[5], F_OUT),
        wv=lin_w(ks[6], F_IN, F_OUT), bv=lin_b(ks[7], F_OUT),
        we=lin_w(ks[8], 1, F_OUT),                       # lin_edge (bias=False)
        wskip=lin_w(ks[9], F_IN, F_OUT), bskip=lin_b(ks[10], F_OUT),
        gn_w=jnp.ones((1, F_OUT), jnp.float32),          # GraphNorm weight  (init=1)
        gn_b=jnp.zeros((1, F_OUT), jnp.float32),         # GraphNorm bias    (init=0)
        gn_ms=jnp.ones((1, F_OUT), jnp.float32),         # GraphNorm mean_scale (init=1)
    )

    out = jax.block_until_ready(la_forward(xs, edge_indices, edge_attrs, params))
    assert out.shape == (B, F_OUT, F_OUT)
    assert bool(jnp.all(jnp.isfinite(out)))

    ref = jnp.stack([la_reference(xs[i], edge_indices[i], edge_attrs[i], params)
                     for i in range(B)])
    ref = jax.block_until_ready(ref)
    max_err = float(jnp.max(jnp.abs(out - ref)))
    assert max_err < 5e-2, f"kernel vs reference mismatch: {max_err}"

    print("KERNEL_OK")
</pallas_src>

<mosaic_0001>
module attributes {stable_mosaic.version = 11 : i64} {
  func.func @la_kernel(%arg0: i32, %arg1: memref<1x24x128xf32, #tpu.memory_space<vmem>>, %arg2: memref<88x128xf32, #tpu.memory_space<vmem>>, %arg3: memref<1x32x32xf32, #tpu.memory_space<vmem>>) attributes {dimension_semantics = [#tpu.dimension_semantics<parallel>], iteration_bounds = array<i64: 8>, scalar_prefetch = 0 : i64, scratch_operands = 0 : i64, tpu.core_type = #tpu.core_type<tc>, window_params = [{transform_indices = @transform_0, window_bounds = array<i64: 1, 24, 128>}, {pipeline_mode = #tpu.pipeline_mode<synchronous>, transform_indices = @transform_1, window_bounds = array<i64: 88, 128>}, {transform_indices = @transform_2, window_bounds = array<i64: 1, 32, 32>}]} {
    %c0 = arith.constant 0 : index
    %c0_0 = arith.constant 0 : index
    %c0_1 = arith.constant 0 : index
    %0 = vector.load %arg1[%c0, %c0_0, %c0_1] : memref<1x24x128xf32, #tpu.memory_space<vmem>>, vector<1x24x128xf32>
    %1 = vector.shape_cast %0 : vector<1x24x128xf32> to vector<24x128xf32>
    %2 = vector.extract_strided_slice %1 {offsets = [0, 0], sizes = [16, 16], strides = [1, 1]} : vector<24x128xf32> to vector<16x16xf32>
    %3 = vector.extract_strided_slice %1 {offsets = [16, 0], sizes = [1, 48], strides = [1, 1]} : vector<24x128xf32> to vector<1x48xf32>
    %4 = vector.extract_strided_slice %1 {offsets = [17, 0], sizes = [1, 48], strides = [1, 1]} : vector<24x128xf32> to vector<1x48xf32>
    %5 = vector.extract_strided_slice %1 {offsets = [18, 0], sizes = [1, 48], strides = [1, 1]} : vector<24x128xf32> to vector<1x48xf32>
    %c0_2 = arith.constant 0 : index
    %c0_3 = arith.constant 0 : index
    %6 = vector.load %arg2[%c0_2, %c0_3] : memref<88x128xf32, #tpu.memory_space<vmem>>, vector<16x128xf32>
    %c16 = arith.constant 16 : index
    %c0_4 = arith.constant 0 : index
    %7 = vector.load %arg2[%c16, %c0_4] : memref<88x128xf32, #tpu.memory_space<vmem>>, vector<1x128xf32>
    %c17 = arith.constant 17 : index
    %c0_5 = arith.constant 0 : index
    %8 = vector.load %arg2[%c17, %c0_5] : memref<88x128xf32, #tpu.memory_space<vmem>>, vector<1x128xf32>
    %9 = vector.extract_strided_slice %8 {offsets = [0, 0], sizes = [1, 32], strides = [1, 1]} : vector<1x128xf32> to vector<1x32xf32>
    %10 = vector.extract_strided_slice %8 {offsets = [0, 32], sizes = [1, 32], strides = [1, 1]} : vector<1x128xf32> to vector<1x32xf32>
    %11 = vector.extract_strided_slice %8 {offsets = [0, 64], sizes = [1, 32], strides = [1, 1]} : vector<1x128xf32> to vector<1x32xf32>
    %12 = vector.extract_strided_slice %8 {offsets = [0, 96], sizes = [1, 32], strides = [1, 1]} : vector<1x128xf32> to vector<1x32xf32>
    %c24 = arith.constant 24 : index
    %c0_6 = arith.constant 0 : index
    %13 = vector.load %arg2[%c24, %c0_6] : memref<88x128xf32, #tpu.memory_space<vmem>>, vector<64x32xf32>
    %14 = tpu.iota {dimensions = array<i32: 0>} : vector<16x48xi32>
    %15 = arith.sitofp %14 : vector<16x48xi32> to vector<16x48xf32>
    %16 = vector.broadcast %3 : vector<1x48xf32> to vector<16x48xf32>
    %17 = arith.cmpf oeq, %15, %16 : vector<16x48xf32>
    %18 = arith.extui %17 : vector<16x48xi1> to vector<16x48xi32>
    %19 = arith.sitofp %18 : vector<16x48xi32> to vector<16x48xf32>
    %20 = vector.broadcast %4 : vector<1x48xf32> to vector<16x48xf32>
    %21 = arith.cmpf oeq, %15, %20 : vector<16x48xf32>
    %22 = arith.extui %21 : vector<16x48xi1> to vector<16x48xi32>
    %23 = arith.sitofp %22 : vector<16x48xi32> to vector<16x48xf32>
    %cst = arith.constant dense<0.000000e+00> : vector<16x16xf32>
    %24 = tpu.matmul %23, %19, %cst {dimension_numbers = #tpu.dot_dimension_numbers<[1], [1], [0], [0], [0, 0, 1, 0], [], []>} : vector<16x48xf32>, vector<16x48xf32>, vector<16x16xf32> -> vector<16x16xf32>
    %25 = vector.broadcast %5 : vector<1x48xf32> to vector<16x48xf32>
    %26 = arith.mulf %19, %25 : vector<16x48xf32>
    %cst_7 = arith.constant dense<0.000000e+00> : vector<16x16xf32>
    %27 = tpu.matmul %23, %26, %cst_7 {dimension_numbers = #tpu.dot_dimension_numbers<[1], [1], [0], [0], [0, 0, 1, 0], [], []>} : vector<16x48xf32>, vector<16x48xf32>, vector<16x16xf32> -> vector<16x16xf32>
    %28 = arith.truncf %2 : vector<16x16xf32> to vector<16x16xbf16>
    %29 = arith.truncf %6 : vector<16x128xf32> to vector<16x128xbf16>
    %cst_8 = arith.constant dense<0.000000e+00> : vector<16x128xf32>
    %30 = tpu.matmul %28, %29, %cst_8 {dimension_numbers = #tpu.dot_dimension_numbers<[1], [0], [0], [1], [0, 0, 1, 1], [], []>} : vector<16x16xbf16>, vector<16x128xbf16>, vector<16x128xf32> -> vector<16x128xf32>
    %31 = vector.broadcast %7 : vector<1x128xf32> to vector<16x128xf32>
    %32 = arith.addf %30, %31 : vector<16x128xf32>
    %33 = vector.extract_strided_slice %32 {offsets = [0, 0], sizes = [16, 32], strides = [1, 1]} : vector<16x128xf32> to vector<16x32xf32>
    %34 = vector.extract_strided_slice %32 {offsets = [0, 32], sizes = [16, 32], strides = [1, 1]} : vector<16x128xf32> to vector<16x32xf32>
    %35 = vector.extract_strided_slice %32 {offsets = [0, 64], sizes = [16, 32], strides = [1, 1]} : vector<16x128xf32> to vector<16x32xf32>
    %36 = vector.extract_strided_slice %32 {offsets = [0, 96], sizes = [16, 32], strides = [1, 1]} : vector<16x128xf32> to vector<16x32xf32>
    %37 = vector.shape_cast %33 : vector<16x32xf32> to vector<1x16x32xf32>
    %38 = vector.shape_cast %37 : vector<1x16x32xf32> to vector<1x16x32xf32>
    %39 = vector.broadcast %38 : vector<1x16x32xf32> to vector<4x16x32xf32>
    %40 = vector.shape_cast %39 : vector<4x16x32xf32> to vector<64x32xf32>
    %41 = arith.mulf %40, %13 : vector<64x32xf32>
    %42 = vector.shape_cast %24 : vector<16x16xf32> to vector<1x16x16xf32>
    %43 = vector.shape_cast %42 : vector<1x16x16xf32> to vector<1x16x16xf32>
    %44 = vector.broadcast %43 : vector<1x16x16xf32> to vector<4x16x16xf32>
    %45 = vector.shape_cast %44 : vector<4x16x16xf32> to vector<64x16xf32>
    %46 = vector.shape_cast %27 : vector<16x16xf32> to vector<1x16x16xf32>
    %47 = vector.shape_cast %46 : vector<1x16x16xf32> to vector<1x16x16xf32>
    %48 = vector.broadcast %47 : vector<1x16x16xf32> to vector<4x16x16xf32>
    %49 = vector.shape_cast %48 : vector<4x16x16xf32> to vector<64x16xf32>
    %cst_9 = arith.constant dense<0.000000e+00> : vector<64x16xf32>
    %50 = tpu.matmul %41, %34, %cst_9 {dimension_numbers = #tpu.dot_dimension_numbers<[1], [1], [0], [0], [0, 0, 1, 0], [], []>} : vector<64x32xf32>, vector<16x32xf32>, vector<64x16xf32> -> vector<64x16xf32>
    %51 = vector.broadcast %9 : vector<1x32xf32> to vector<64x32xf32>
    %52 = arith.mulf %41, %51 : vector<64x32xf32>
    %cst_10 = arith.constant dense<0.000000e+00> : vector<64xf32>
    %53 = vector.multi_reduction <add>, %52, %cst_10 [1] : vector<64x32xf32> to vector<64xf32>
    %54 = vector.shape_cast %53 : vector<64xf32> to vector<64x1xf32>
    %55 = vector.broadcast %54 : vector<64x1xf32> to vector<64x16xf32>
    %56 = arith.mulf %49, %55 : vector<64x16xf32>
    %57 = arith.addf %50, %56 : vector<64x16xf32>
    %cst_11 = arith.constant 0.353553385 : f32
    %58 = vector.broadcast %cst_11 : f32 to vector<64x16xf32>
    %59 = arith.mulf %57, %58 : vector<64x16xf32>
    %cst_12 = arith.constant 0.000000e+00 : f32
    %60 = vector.broadcast %cst_12 : f32 to vector<64x16xf32>
    %61 = arith.cmpf ogt, %45, %60 : vector<64x16xf32>
    %cst_13 = arith.constant -1.000000e+30 : f32
    %62 = vector.broadcast %cst_13 : f32 to vector<64x16xf32>
    %63 = arith.select %61, %59, %62 : vector<64x16xi1>, vector<64x16xf32>
    %cst_14 = arith.constant dense<0xFF800000> : vector<64xf32>
    %64 = vector.multi_reduction <maximumf>, %63, %cst_14 [1] : vector<64x16xf32> to vector<64xf32>
    %65 = vector.shape_cast %64 : vector<64xf32> to vector<64x1xf32>
    %66 = vector.broadcast %65 : vector<64x1xf32> to vector<64x16xf32>
    %67 = arith.subf %59, %66 : vector<64x16xf32>
    %cst_15 = arith.constant -1.000000e+30 : f32
    %68 = vector.broadcast %cst_15 : f32 to vector<64x16xf32>
    %69 = arith.select %61, %67, %68 : vector<64x16xi1>, vector<64x16xf32>
    %70 = math.exp %69 : vector<64x16xf32>
    %cst_16 = arith.constant dense<0.000000e+00> : vector<64xf32>
    %71 = vector.multi_reduction <add>, %70, %cst_16 [1] : vector<64x16xf32> to vector<64xf32>
    %72 = vector.shape_cast %71 : vector<64xf32> to vector<64x1xf32>
    %cst_17 = arith.constant 1.000000e-16 : f32
    %73 = vector.broadcast %cst_17 : f32 to vector<64x1xf32>
    %74 = arith.addf %72, %73 : vector<64x1xf32>
    %75 = vector.broadcast %74 : vector<64x1xf32> to vector<64x16xf32>
    %76 = arith.divf %70, %75 : vector<64x16xf32>
    %77 = arith.truncf %76 : vector<64x16xf32> to vector<64x16xbf16>
    %78 = arith.truncf %35 : vector<16x32xf32> to vector<16x32xbf16>
    %cst_18 = arith.constant dense<0.000000e+00> : vector<64x32xf32>
    %79 = tpu.matmul %77, %78, %cst_18 {dimension_numbers = #tpu.dot_dimension_numbers<[1], [0], [0], [1], [0, 0, 1, 1], [], []>} : vector<64x16xbf16>, vector<16x32xbf16>, vector<64x32xf32> -> vector<64x32xf32>
    %80 = arith.mulf %76, %49 : vector<64x16xf32>
    %cst_19 = arith.constant dense<0.000000e+00> : vector<64xf32>
    %81 = vector.multi_reduction <add>, %80, %cst_19 [1] : vector<64x16xf32> to vector<64xf32>
    %82 = vector.shape_cast %81 : vector<64xf32> to vector<64x1xf32>
    %83 = vector.broadcast %82 : vector<64x1xf32> to vector<64x32xf32>
    %84 = vector.broadcast %9 : vector<1x32xf32> to vector<64x32xf32>
    %85 = arith.mulf %83, %84 : vector<64x32xf32>
    %86 = arith.addf %79, %85 : vector<64x32xf32>
    %87 = arith.mulf %86, %13 : vector<64x32xf32>
    %88 = vector.shape_cast %87 : vector<64x32xf32> to vector<4x16x32xf32>
    %cst_20 = arith.constant dense<0.000000e+00> : vector<16x32xf32>
    %89 = vector.multi_reduction <add>, %88, %cst_20 [0] : vector<4x16x32xf32> to vector<16x32xf32>
    %90 = arith.addf %89, %36 : vector<16x32xf32>
    %cst_21 = arith.constant dense<0.000000e+00> : vector<32xf32>
    %91 = vector.multi_reduction <add>, %90, %cst_21 [0] : vector<16x32xf32> to vector<32xf32>
    %92 = vector.shape_cast %91 : vector<32xf32> to vector<1x32xf32>
    %cst_22 = arith.constant 1.600000e+01 : f32
    %93 = vector.broadcast %cst_22 : f32 to vector<1x32xf32>
    %94 = arith.divf %92, %93 : vector<1x32xf32>
    %95 = arith.mulf %94, %12 : vector<1x32xf32>
    %96 = vector.broadcast %95 : vector<1x32xf32> to vector<16x32xf32>
    %97 = arith.subf %90, %96 : vector<16x32xf32>
    %98 = arith.mulf %97, %97 : vector<16x32xf32>
    %cst_23 = arith.constant dense<0.000000e+00> : vector<32xf32>
    %99 = vector.multi_reduction <add>, %98, %cst_23 [0] : vector<16x32xf32> to vector<32xf32>
    %100 = vector.shape_cast %99 : vector<32xf32> to vector<1x32xf32>
    %cst_24 = arith.constant 1.600000e+01 : f32
    %101 = vector.broadcast %cst_24 : f32 to vector<1x32xf32>
    %102 = arith.divf %100, %101 : vector<1x32xf32>
    %103 = vector.broadcast %10 : vector<1x32xf32> to vector<16x32xf32>
    %104 = arith.mulf %103, %97 : vector<16x32xf32>
    %cst_25 = arith.constant 9.99999974E-6 : f32
    %105 = vector.broadcast %cst_25 : f32 to vector<1x32xf32>
    %106 = arith.addf %102, %105 : vector<1x32xf32>
    %107 = math.rsqrt %106 : vector<1x32xf32>
    %108 = vector.broadcast %107 : vector<1x32xf32> to vector<16x32xf32>
    %109 = arith.mulf %104, %108 : vector<16x32xf32>
    %110 = vector.broadcast %11 : vector<1x32xf32> to vector<16x32xf32>
    %111 = arith.addf %109, %110 : vector<16x32xf32>
    %cst_26 = arith.constant 0.000000e+00 : f32
    %112 = vector.broadcast %cst_26 : f32 to vector<16x32xf32>
    %113 = arith.maximumf %111, %112 : vector<16x32xf32>
    %cst_27 = arith.constant dense<0.000000e+00> : vector<32x32xf32>
    %114 = tpu.matmul %113, %113, %cst_27 {dimension_numbers = #tpu.dot_dimension_numbers<[0], [0], [1], [1], [0, 1, 1, 1], [], []>} : vector<16x32xf32>, vector<16x32xf32>, vector<32x32xf32> -> vector<32x32xf32>
    %115 = vector.shape_cast %114 : vector<32x32xf32> to vector<1x32x32xf32>
    %cst_28 = arith.constant dense<0x7F800000> : vector<1xf32>
    %116 = vector.multi_reduction <minimumf>, %115, %cst_28 [1, 2] : vector<1x32x32xf32> to vector<1xf32>
    %117 = vector.shape_cast %116 : vector<1xf32> to vector<1x1x1xf32>
    %118 = vector.extract %117[0, 0, 0] : f32 from vector<1x1x1xf32>
    %119 = vector.shape_cast %114 : vector<32x32xf32> to vector<1x32x32xf32>
    %cst_29 = arith.constant dense<0xFF800000> : vector<1xf32>
    %120 = vector.multi_reduction <maximumf>, %119, %cst_29 [1, 2] : vector<1x32x32xf32> to vector<1xf32>
    %121 = vector.shape_cast %120 : vector<1xf32> to vector<1x1x1xf32>
    %122 = vector.extract %121[0, 0, 0] : f32 from vector<1x1x1xf32>
    %123 = vector.broadcast %118 : f32 to vector<32x32xf32>
    %124 = arith.subf %114, %123 : vector<32x32xf32>
    %125 = arith.subf %122, %118 : f32
    %cst_30 = arith.constant 9.99999993E-9 : f32
    %126 = arith.addf %125, %cst_30 : f32
    %127 = vector.broadcast %126 : f32 to vector<32x32xf32>
    %128 = arith.divf %124, %127 : vector<32x32xf32>
    %c0_31 = arith.constant 0 : index
    %c0_32 = arith.constant 0 : index
    %c0_33 = arith.constant 0 : index
    %129 = vector.load %arg3[%c0_31, %c0_32, %c0_33] : memref<1x32x32xf32, #tpu.memory_space<vmem>>, vector<1x32x32xf32>
    %130 = vector.shape_cast %129 : vector<1x32x32xf32> to vector<32x32xf32>
    %131 = vector.shape_cast %128 : vector<32x32xf32> to vector<1x32x32xf32>
    tpu.vector_store %arg3[%c0_31, %c0_32, %c0_33], %131 {strides = array<i32>} : memref<1x32x32xf32, #tpu.memory_space<vmem>>, vector<1x32x32xf32>,
    return
  }
  func.func @transform_0(%arg0: i32) -> (i32, i32, i32) {
    %c0_i32 = arith.constant 0 : i32
    %c0_i32_0 = arith.constant 0 : i32
    %c0_i32_1 = arith.constant 0 : i32
    return %arg0, %c0_i32, %c0_i32_0 : i32, i32, i32
  }
  func.func @transform_1(%arg0: i32) -> (i32, i32) {
    %c0_i32 = arith.constant 0 : i32
    %c0_i32_0 = arith.constant 0 : i32
    %c0_i32_1 = arith.constant 0 : i32
    return %c0_i32, %c0_i32_0 : i32, i32
  }
  func.func @transform_2(%arg0: i32) -> (i32, i32, i32) {
    %c0_i32 = arith.constant 0 : i32
    %c0_i32_0 = arith.constant 0 : i32
    %c0_i32_1 = arith.constant 0 : i32
    return %arg0, %c0_i32, %c0_i32_0 : i32, i32, i32
  }
}

</mosaic_0001>

<bundles_post_ra>
// kernel: la_forward.1
= control target key start
LH: loop header
LB: loop body
LE: loop exit
PB: predicated region body
PF: predicated region fallthrough
CT: control target
= control target key end

     0   :  { %7 = vsyncpa [#allocation3], 0  ;;  %s1922_s0 = inlined_call_operand.vmem [shape: f32[8,24,128], index: 0, kind: input, shape index: {}]   ;;  %s1923_s1 = inlined_call_operand.vmem [shape: f32[88,128], index: 1, kind: input, shape index: {}]   ;;  %s1924_s2 = inlined_call_operand.hbm [shape: f32[8,32,32], index: 2, kind: output, shape index: {}]  }
   0x1   :  { %9 = vsyncpa [#allocation3 + $0x1], 0  ;;  %s1533_s9 = smov 0   ;;  %s1535_s10 = smov 0  }
   0x2   :  { %s1537_s11 = smov 0   ;;  %s1539_s12 = smov 0  }
   0x3 LB: > { %s1554_s13 = sadd.s32 4294967295, %s1508_s12   ;;  %s1201_s14 = sadd.s32 4294967294, %s1508_s12   ;;  %s1508_s12 = sphi %s1539_s12, %s1930_s12   ;;  %s1504_s11 = sphi %s1537_s11, %s1929_s11   ;;  %s1500_s10 = sphi %s1535_s10, %s1928_s10   ;;  %s1496_s9 = sphi %s1533_s9, %s1927_s9  }
   0x4   : > { %s1558_s15 = sadd.s32 1, %s1508_s12   ;;  %s69_s16 = sadd.s32 1, %s1504_s11 }
   0x5   : > { %s66_s17 = ssub.s32 %s1508_s12, %s1558_s15  ;;  %p79_p0 = scmp.ne.s32.totalorder %s1504_s11, %s1500_s10 }
   0x6   : > { %p67_p1 = scmp.eq.s32.totalorder %s66_s17, 0  ;;  %p80_p2 = scmp.eq.s32.totalorder %s1554_s13, 7 }
   0x7   : > { %p85_p3 = scmp.ne.s32.totalorder %s1500_s10, %s1496_s9  ;;  %p86_p4 = scmp.eq.s32.totalorder %s1201_s14, 7 }
   0x8   : > { %s1569_s18 = scalar_select %p67_p1, %s1504_s11, %s69_s16  }
   0x9   : > { %p1571_p5 = por %p80_p2, %p79_p0  ;;  %p1575_p6 = por %p86_p4, %p85_p3 }
   0xa   : > { %p1204_p7 = scmp.ge.s32.totalorder %s1508_s12, 1  ;;  %p115_p8 = scmp.lt.s32.totalorder %s1508_s12, 9 }
   0xc   : > { %p116_p9 = pnand %p1204_p7, %p115_p8 }
   0xd   : > { %p137_p10 = scmp.lt.s32.totalorder (!%p116_p9), %s1554_s13, 7  ;;  %v158_v0 = vlaneseq (!%p116_p9)  ;;  %vm183_vm0 = vcmask (!%p116_p9), 392192   ;;  %v1510_v12 = vmov (!%p116_p9), 0.0   ;;  %v146_v20 = vld [vmem:[%s1923_s1] sm:$0xff] (!%p116_p9)  ;;  %v147_v21 = vld [vmem:[%s1923_s1 + $0x8] sm:$0xff] (!%p116_p9)  ;;  %vm1511_vm6 = vmmov (!%p116_p9), 0  }
   0xe   : > { %119 = sbr.rel (%p116_p9) target bundleno = 2063 (0x80f), region = 28  ;;  %vm1333_vm4 = vmpackc.low (!%p116_p9), %vm183_vm0, %vm183_vm0  ;;  %v359_v25 = vpack.c.bf16 (!%p116_p9), %v147_v21, %v146_v20  ;;  %vm364_vm7 = vcmask (!%p116_p9), 130048   ;;  %v1614_v29 = vld [vmem:[%s1923_s1 + $0x11] sm:$0x1] (!%p116_p9)  ;;  %v1219_v30 = vld [vmem:[%s1923_s1 + $0x10] ss:$0 sm:$0xff] (!%p116_p9) }
   0xf   : > { %v159_v1 = vshrl.u32 (!%p116_p9), %v158_v0, 7  ;;  %v1622_v32 = vld [vmem:[%s1923_s1 + $0x18] sm:$0xff] (!%p116_p9)  ;;  %v1627_v33 = vld [vmem:[%s1923_s1 + $0x28] sm:$0xff] (!%p116_p9)  ;;  %vm429_vm8 = vcmask (!%p116_p9), 261120   ;;  %s1512_s23 = smov (!%p116_p9), 96   ;;  %v1665_v50 = vld [vmem:[%s1923_s1 + $0x20] sm:$0xff] (!%p116_p9) }
  0x10   : > { %v1632_v34 = vld [vmem:[%s1923_s1 + $0x38] sm:$0xff] (!%p116_p9)  ;;  %v1651_v44 = vld [vmem:[%s1923_s1 + $0x48] sm:$0xff] (!%p116_p9)  ;;  %v1674_v54 = vld [vmem:[%s1923_s1 + $0x30] sm:$0xff] (!%p116_p9)  ;;  %s1513_s4 = smov (!%p116_p9), 64   ;;  %s1514_s5 = smov (!%p116_p9), 32  }
  0x11   : > { %v160_v2 = vadd.s32 (!%p116_p9), 8, %v159_v1  ;;  %v1583_v3 = vsub.s32 (!%p116_p9), 0, %v159_v1  ;;  %v175_v4 = vsub.s32 (!%p116_p9), 1, %v159_v1  ;;  %v273_v5 = vsub.s32 (!%p116_p9), 2, %v159_v1  ;;  %v1683_v58 = vld [vmem:[%s1923_s1 + $0x40] sm:$0xff] (!%p116_p9)  ;;  %v1696_v0 = vld [vmem:[%s1923_s1 + $0x50] sm:$0xff] (!%p116_p9)  ;;  %vm1345_vm9 = vmpackc.low (!%p116_p9), %vm429_vm8, %vm429_vm8 }
  0x12   : > { %v161_v6 = vcvt.s32.f32 (!%p116_p9), %v159_v1  ;;  %s134_s16 = sand.u32 (!%p116_p9), 1, %s1500_s10   ;;  %s1515_s28 = smov (!%p116_p9), [#allocation2]  }
  0x13   : > { %v162_v7 = vcvt.s32.f32 (!%p116_p9), %v160_v2  ;;  %v1636_v35 = vrot.slane (!%p116_p9), %v1614_v29, %v1583_v3  ;;  %s1205_s17 = sshll.u32 (!%p116_p9), %s134_s16, 5  ;;  %s1450_s29 = sshll.u32 (!%p116_p9), %s1515_s28, 4  ;;  %s1451_s29 = int_to_ptr.vmem [resolvable:$false] %s1450_s29 }
  0x14   : > { %s1452_s30 = scalar_lea.vmem (!%p116_p9), %s1451_s29, 1024 }
  0x15   : > { %s138_s21 = scalar_select %p137_p10, %s1554_s13, 7 }
  0x17   : > { %s1354_s22 = smul.u32 24, %s138_s21  ;;  %s1244_s21 = sshll.u32 %s1554_s13, 9 }
  0x18   : > { %s1873_s26 = scalar_lea.hbm %s1924_s2, %s1244_s21  ;;  %s1881_s13 = scalar_lea.sflag [#allocation3], %s134_s16 }
  0x19   : > { %s1588_s25 = scalar_lea.vmem %s1922_s0, %s1354_s22  ;;  %s136_s22 = scalar_lea.vmem [#allocation2], %s1205_s17 }
  0x1a   : > { %v145_v8 = vld [vmem:[%s1588_s25 + $0x10] sm:$0xff]  ;;  %v143_v22 = vld [vmem:[%s1588_s25] sm:$0xff]  ;;  %v144_v23 = vld [vmem:[%s1588_s25 + $0x8] sm:$0xff] }
  0x1b   : > { %v166_v9 = vrot.slane %v145_v8, %v1583_v3  ;;  %v176_v10 = vrot.slane %v145_v8, %v175_v4  ;;  %v274_v11 = vrot.slane %v145_v8, %v273_v5  ;;  %v358_v26 = vpack.c.bf16 %v144_v23, %v143_v22 }
  0x1d   : > { %vm167_vm1 = vcmp.eq.f32.partialorder %v161_v6, %v166_v9  ;;  %vm168_vm2 = vcmp.eq.f32.partialorder %v162_v7, %v166_v9  ;;  %vm177_vm3 = vcmp.eq.f32.partialorder %v161_v6, %v176_v10  ;;  %vm178_vm5 = vcmp.eq.f32.partialorder %v162_v7, %v176_v10 }
  0x1e   : > { %v1207_v13 = vsel %vm167_vm1, 1.0, %v1510_v12  ;;  %v1208_v14 = vsel %vm168_vm2, 1.0, %v1510_v12  ;;  %v1209_v15 = vsel %vm177_vm3, 1.0, %v1510_v12  ;;  %v1210_v24 = vsel %vm178_vm5, 1.0, %v1510_v12 }
  0x1f   : > { %v1332_v16 = vpack.c.bf16 %v1208_v14, %v1207_v13  ;;  %1280 = vmatprep.mubr.msk.f32.mxu0 %vm183_vm0, %v1209_v15  ;;  %v275_v17 = vmul.f32 %v1207_v13, %v274_v11  ;;  %v276_v18 = vmul.f32 %v1208_v14, %v274_v11  ;;  %1287 = vmatprep.mubr.msk.f32.mxu1 %vm183_vm0, %v1209_v15 }
  0x21   : > { %1334 = vmatprep.subr.msk.bf16.mxu0 %vm1333_vm4, %v1332_v16  ;;  %v1338_v19 = vpack.c.bf16 %v276_v18, %v275_v17 }
  0x22   : > { %1337 = vmatpush3.bf16.xpose.msk.msra.mxu0 %vm1333_vm4, %v1332_v16 }
  0x23   : > { %1290 = vmatprep.subr.bf16.mxu0 %v1510_v12  ;;  %1340 = vmatprep.subr.msk.bf16.mxu1 %vm1333_vm4, %v1338_v19 }
  0x24   : > { %1343 = vmatpush3.bf16.xpose.msk.msra.mxu1 %vm1333_vm4, %v1338_v19 }
  0x29   : > { %1281 = vmatmul.mubr.msk.f32.vlgmr.msra.gmra.mrb[0].mxu0 %vm183_vm0, %v1210_v24 }
  0x2a   : > { %1291 = vmatpush3.bf16.msra.mxu0 %v359_v25  ;;  %1292 = vmatprep.mubr.msk.bf16.mxu0 %vm1511_vm6, %v1510_v12 }
  0x2b   : > { %1288 = vmatmul.mubr.msk.f32.vlgmr.msra.gmra.mrb[0].mxu1 %vm183_vm0, %v1210_v24 }
  0x2d   : > { %1293 = vmatmul.mubr.msk.bf16.vlgmr.msra.gmra.mrb[4].mxu0 %vm364_vm7, %v358_v26 }
  0xfc   : > { %v1607_v27 = vpop.f32.mrb[0].mxu0 }
  0xfd   : > { %v1609_v28 = vpop.f32.mrb[1].mxu0  ;;  %vm610_vm10 = vcmp.gt.f32.partialorder %v1607_v27, 0.0 }
  0xfe   : > { %v1685_v59 = vpop.f32.mrb[0].mxu1  ;;  %vm609_vm11 = vcmp.gt.f32.partialorder %v1609_v28, 0.0 }
  0xff   : > { %v1691_v63 = vpop.f32.mrb[1].mxu1 }
 0x100   : > { %v402_v31 = vpop.f32.mrb[4].mxu0 }
 0x101   : > { %v1638_v36 = vadd.f32 %v1219_v30, %v402_v31  ;;  %v1294_v37 = vpop.f32.mrb[5].mxu0 }
 0x102   : > { %v405_v38 = vpop.f32.mrb[6].mxu0 }
 0x103   : > { %v1640_v39 = vadd.f32 %v1219_v30, %v405_v38  ;;  %v1295_v40 = vpop.f32.mrb[7].mxu0  ;;  %v409_v41 = vmul.f32 %v1638_v36, %v1622_v32  ;;  %v411_v42 = vmul.f32 %v1638_v36, %v1627_v33  ;;  %v413_v43 = vmul.f32 %v1638_v36, %v1632_v34 }
 0x104   : > { %v415_v49 = vmul.f32 %v1638_v36, %v1651_v44 }
 0x105   : > { %1300 = vmatprep.mubr.msk.f32.mxu1 %vm429_vm8, %v409_v41  ;;  %v1405_v45 = vpack.i.bf16 %v1640_v39, %v1638_v36  ;;  %v423_v46 = vmul.f32 %v1636_v35, %v411_v42  ;;  %v425_v48 = vmul.f32 %v1636_v35, %v413_v43  ;;  %v410_v53 = vmul.f32 %v1640_v39, %v1665_v50 }
 0x106   : > { %v427_v52 = vmul.f32 %v1636_v35, %v415_v49  ;;  %v412_v57 = vmul.f32 %v1640_v39, %v1674_v54  ;;  %v414_v62 = vmul.f32 %v1640_v39, %v1683_v58  ;;  %v416_v4 = vmul.f32 %v1640_v39, %v1696_v0 }
 0x107   : > { %1406 = vrot.lane.b32.xlu0 %v1405_v45, %s1512_s23  ;;  %v436_v47 = vsel %vm429_vm8, %v423_v46, 0.0  ;;  %v442_v51 = vsel %vm429_vm8, %v425_v48, 0.0  ;;  %v422_v56 = vmul.f32 %v1636_v35, %v410_v53  ;;  %v421_v8 = vmul.f32 %v1636_v35, %v409_v41 }
 0x108   : > { %437 = vadd.xlane.f32.xlu1 %v436_v47  ;;  %v448_v55 = vsel %vm429_vm8, %v427_v52, 0.0  ;;  %v424_v61 = vmul.f32 %v1636_v35, %v412_v57  ;;  %v426_v2 = vmul.f32 %v1636_v35, %v414_v62  ;;  %v428_v6 = vmul.f32 %v1636_v35, %v416_v4 }
 0x109   : > { %v433_v60 = vsel %vm429_vm8, %v422_v56, 0.0  ;;  %v430_v9 = vsel %vm429_vm8, %v421_v8, 0.0 }
 0x10a   : > { %v439_v1 = vsel %vm429_vm8, %v424_v61, 0.0  ;;  %v445_v5 = vsel %vm429_vm8, %v426_v2, 0.0  ;;  %v451_v7 = vsel %vm429_vm8, %v428_v6, 0.0 }
 0x10c   : > { %443 = vadd.xlane.f32.xlu1 %v442_v51 }
 0x110   : > { %449 = vadd.xlane.f32.xlu1 %v448_v55 }
 0x114   : > { %434 = vadd.xlane.f32.xlu1 %v433_v60 }
 0x118   : > { %440 = vadd.xlane.f32.xlu1 %v439_v1 }
 0x11c   : > { %446 = vadd.xlane.f32.xlu1 %v445_v5 }
 0x120   : > { %452 = vadd.xlane.f32.xlu1 %v451_v7 }
 0x126   : > { %431 = vadd.xlane.f32.xlu0 %v430_v9 }
 0x179   : > { %v1407_v10 = vpop.permute.xlu0 %1406 }
 0x17a   : > { %v1409_v11 = vunpack.i.h.bf16 %v1407_v10  ;;  %v1408_v12 = vunpack.i.l.bf16 %v1407_v10 }
 0x17c   : > { %v1344_v13 = vpack.c.bf16 %v1409_v11, %v1408_v12 }
 0x17e   : > { %1346 = vmatprep.subr.msk.bf16.mxu1 %vm1345_vm9, %v1344_v13 }
 0x17f   : > { %1349 = vmatpush3.bf16.xpose.msk.msra.mxu1 %vm1345_vm9, %v1344_v13 }
 0x186   : > { %1301 = vmatmul.mubr.msk.f32.vlgmr.msra.gmra.mrb[2].mxu1 %vm429_vm8, %v410_v53 }
 0x187   : > { %1303 = vmatprep.mubr.msk.f32.mxu1 %vm429_vm8, %v411_v42 }
 0x18a   : > { %1304 = vmatmul.mubr.msk.f32.gmra.mrb[4].mxu1 %vm429_vm8, %v412_v57 }
 0x18b   : > { %1306 = vmatprep.mubr.msk.f32.mxu1 %vm429_vm8, %v413_v43 }
 0x18e   : > { %1307 = vmatmul.mubr.msk.f32.gmra.mrb[6].mxu1 %vm429_vm8, %v414_v62 }
 0x18f   : > { %1309 = vmatprep.mubr.msk.f32.mxu1 %vm429_vm8, %v415_v49 }
 0x192   : > { %1310 = vmatmul.mubr.msk.f32.gmra.mrb[8].mxu1 %vm429_vm8, %v416_v4 }
 0x195   : > { %v438_v14 = vpop.xlane.xlu1 %437 }
 0x196   : > { %v456_v37 = vmul.f32 %v438_v14, %v1691_v63 }
 0x199   : > { %v444_v15 = vpop.xlane.xlu1 %443 }
 0x19a   : > { %v458_v51 = vmul.f32 %v444_v15, %v1691_v63 }
 0x19d   : > { %v450_v16 = vpop.xlane.xlu1 %449 }
 0x19e   : > { %v460_v6 = vmul.f32 %v450_v16, %v1691_v63 }
 0x1a1   : > { %v435_v17 = vpop.xlane.xlu1 %434 }
 0x1a2   : > { %v455_v20 = vmul.f32 %v1685_v59, %v435_v17 }
 0x1a5   : > { %v441_v18 = vpop.xlane.xlu1 %440 }
 0x1a6   : > { %v457_v30 = vmul.f32 %v1685_v59, %v441_v18 }
 0x1a9   : > { %v447_v25 = vpop.xlane.xlu1 %446 }
 0x1aa   : > { %v459_v47 = vmul.f32 %v1685_v59, %v447_v25 }
 0x1ad   : > { %v453_v52 = vpop.xlane.xlu1 %452 }
 0x1ae   : > { %v461_v1 = vmul.f32 %v1685_v59, %v453_v52 }
 0x1b3   : > { %v432_v19 = vpop.xlane.xlu0 %431 }
 0x1b4   : > { %v454_v21 = vmul.f32 %v432_v19, %v1691_v63 }
 0x259   : > { %v1302_v22 = vpop.f32.mrb[2].mxu1 }
 0x25a   : > { %v568_v23 = vadd.f32 %v1302_v22, %v455_v20  ;;  %v562_v24 = vpop.f32.mrb[3].mxu1 }
 0x25b   : > { %v563_v26 = vadd.f32 %v562_v24, %v454_v21 }
 0x25c   : > { %v602_v31 = vmul.f32 0.35355338, %v568_v23 }
 0x25d   : > { %v601_v38 = vmul.f32 0.35355338, %v563_v26  ;;  %v1305_v40 = vpop.f32.mrb[4].mxu1 }
 0x25e   : > { %v578_v41 = vadd.f32 %v1305_v40, %v457_v30  ;;  %v572_v42 = vpop.f32.mrb[5].mxu1  ;;  %v612_v43 = vsel %vm610_vm10, %v602_v31, -1e+30 }
 0x25f   : > { %v573_v45 = vadd.f32 %v572_v42, %v456_v37  ;;  %v622_v46 = vsel %vm364_vm7, %v612_v43, -inf  ;;  %v611_v49 = vsel %vm609_vm11, %v601_v38, -1e+30 }
 0x260   : > { %v604_v48 = vmul.f32 0.35355338, %v578_v41  ;;  %623 = vmax.xlane.f32.xlu1 %v622_v46  ;;  %v619_v61 = vsel %vm364_vm7, %v611_v49, -inf }
 0x261   : > { %v603_v53 = vmul.f32 0.35355338, %v573_v45  ;;  %v1308_v55 = vpop.f32.mrb[6].mxu1 }
 0x262   : > { %v588_v56 = vadd.f32 %v1308_v55, %v459_v47  ;;  %v582_v57 = vpop.f32.mrb[7].mxu1  ;;  %v614_v5 = vsel %vm610_vm10, %v604_v48, -1e+30 }
 0x263   : > { %v583_v60 = vadd.f32 %v582_v57, %v458_v51  ;;  %v613_v62 = vsel %vm609_vm11, %v603_v53, -1e+30  ;;  %v628_v12 = vsel %vm364_vm7, %v614_v5, -inf }
 0x264   : > { %v606_v2 = vmul.f32 0.35355338, %v588_v56  ;;  %620 = vmax.xlane.f32.xlu1 %v619_v61  ;;  %v625_v4 = vsel %vm364_vm7, %v613_v62, -inf }
 0x265   : > { %v605_v7 = vmul.f32 0.35355338, %v583_v60  ;;  %v1311_v8 = vpop.f32.mrb[8].mxu1  ;;  %626 = vmax.xlane.f32.xlu0 %v625_v4 }
 0x266   : > { %v598_v9 = vadd.f32 %v1311_v8, %v461_v1  ;;  %v592_v10 = vpop.f32.mrb[9].mxu1  ;;  %v616_v17 = vsel %vm610_vm10, %v606_v2, -1e+30 }
 0x267   : > { %v593_v11 = vadd.f32 %v592_v10, %v460_v6  ;;  %v615_v13 = vsel %vm609_vm11, %v605_v7, -1e+30  ;;  %v634_v16 = vsel %vm364_vm7, %v616_v17, -inf }
 0x268   : > { %v608_v14 = vmul.f32 0.35355338, %v598_v9  ;;  %629 = vmax.xlane.f32.xlu1 %v628_v12  ;;  %v631_v15 = vsel %vm364_vm7, %v615_v13, -inf }
 0x269   : > { %v607_v18 = vmul.f32 0.35355338, %v593_v11  ;;  %632 = vmax.xlane.f32.xlu0 %v631_v15 }
 0x26a   : > { %v618_v21 = vsel %vm610_vm10, %v608_v14, -1e+30 }
 0x26b   : > { %v617_v19 = vsel %vm609_vm11, %v607_v18, -1e+30  ;;  %v640_v22 = vsel %vm364_vm7, %v618_v21, -inf }
 0x26c   : > { %635 = vmax.xlane.f32.xlu1 %v634_v16  ;;  %v637_v20 = vsel %vm364_vm7, %v617_v19, -inf }
 0x26d   : > { %638 = vmax.xlane.f32.xlu0 %v637_v20 }
 0x270   : > { %641 = vmax.xlane.f32.xlu1 %v640_v22  ;;  %v727_v22 = vpack.c.bf16 %v1640_v39, %v1638_v36 }
 0x2ed   : > { %v624_v23 = vpop.xlane.xlu1 %623 }
 0x2ee   : > { %v644_v24 = vsub.f32 %v602_v31, %v624_v23 }
 0x2f0   : > { %v652_v25 = vsel %vm610_vm10, %v644_v24, -1e+30 }
 0x2f1   : > { %v661_v26 = vmul.f32 1.442695, %v652_v25  ;;  %v621_v30 = vpop.xlane.xlu1 %620 }
 0x2f2   : > { %v643_v37 = vsub.f32 %v601_v38, %v621_v30  ;;  %v627_v40 = vpop.xlane.xlu0 %626 }
 0x2f3   : > { %1410 = vpow2.f32 %v661_v26  ;;  %v645_v41 = vsub.f32 %v603_v53, %v627_v40 }
 0x2f4   : > { %v651_v42 = vsel %vm609_vm11, %v643_v37, -1e+30 }
 0x2f5   : > { %v659_v43 = vmul.f32 1.442695, %v651_v42  ;;  %v653_v45 = vsel %vm609_vm11, %v645_v41, -1e+30  ;;  %v630_v46 = vpop.xlane.xlu1 %629 }
 0x2f6   : > { %v663_v47 = vmul.f32 1.442695, %v653_v45  ;;  %v646_v49 = vsub.f32 %v604_v48, %v630_v46  ;;  %v633_v31 = vpop.xlane.xlu0 %632 }
 0x2f7   : > { %1412 = vpow2.f32 %v659_v43  ;;  %v647_v51 = vsub.f32 %v605_v7, %v633_v31 }
 0x2f8   : > { %v654_v52 = vsel %vm610_vm10, %v646_v49, -1e+30  ;;  %1414 = vpow2.f32 %v663_v47 }
 0x2f9   : > { %v665_v38 = vmul.f32 1.442695, %v654_v52  ;;  %v655_v53 = vsel %vm609_vm11, %v647_v51, -1e+30  ;;  %v636_v55 = vpop.xlane.xlu1 %635 }
 0x2fa   : > { %v667_v56 = vmul.f32 1.442695, %v655_v53  ;;  %v648_v57 = vsub.f32 %v606_v2, %v636_v55  ;;  %v639_v60 = vpop.xlane.xlu0 %638 }
 0x2fb   : > { %1416 = vpow2.f32 %v665_v38  ;;  %v649_v61 = vsub.f32 %v607_v18, %v639_v60 }
 0x2fc   : > { %v656_v48 = vsel %vm610_vm10, %v648_v57, -1e+30  ;;  %1418 = vpow2.f32 %v667_v56 }
 0x2fd   : > { %v1411_v62 = vpop.eup %1410  ;;  %v669_v1 = vmul.f32 1.442695, %v656_v48  ;;  %v657_v4 = vsel %vm609_vm11, %v649_v61, -1e+30  ;;  %v642_v5 = vpop.xlane.xlu1 %641 }
 0x2fe   : > { %v671_v6 = vmul.f32 1.442695, %v657_v4  ;;  %v650_v7 = vsub.f32 %v608_v14, %v642_v5  ;;  %v678_v8 = vsel %vm364_vm7, %v1411_v62, 0.0 }
 0x2ff   : > { %1420 = vpow2.f32 %v669_v1  ;;  %679 = vadd.xlane.f32.xlu1 %v678_v8 }
 0x300   : > { %v658_v2 = vsel %vm610_vm10, %v650_v7, -1e+30  ;;  %1422 = vpow2.f32 %v671_v6 }
 0x301   : > { %v1413_v9 = vpop.eup %1412  ;;  %v673_v10 = vmul.f32 1.442695, %v658_v2 }
 0x302   : > { %v675_v11 = vsel %vm364_vm7, %v1413_v9, 0.0  ;;  %v1415_v12 = vpop.eup %1414 }
 0x303   : > { %1424 = vpow2.f32 %v673_v10  ;;  %676 = vadd.xlane.f32.xlu0 %v675_v11  ;;  %v681_v13 = vsel %vm364_vm7, %v1415_v12, 0.0 }
 0x305   : > { %v1417_v28 = vpop.eup %1416 }
 0x306   : > { %v684_v14 = vsel %vm364_vm7, %v1417_v28, 0.0  ;;  %v1770_v15 = vpop.eup %1418 }
 0x307   : > { %682 = vadd.xlane.f32.xlu0 %v681_v13  ;;  %685 = vadd.xlane.f32.xlu1 %v684_v14  ;;  %v687_v27 = vsel %vm364_vm7, %v1770_v15, 0.0 }
 0x309   : > { %v1772_v17 = vpop.eup %1420 }
 0x30a   : > { %v690_v18 = vsel %vm364_vm7, %v1772_v17, 0.0  ;;  %v1778_v16 = vpop.eup %1422 }
 0x30b   : > { %688 = vadd.xlane.f32.xlu0 %v687_v27  ;;  %691 = vadd.xlane.f32.xlu1 %v690_v18  ;;  %v693_v20 = vsel %vm364_vm7, %v1778_v16, 0.0 }
 0x30d   : > { %v1780_v19 = vpop.eup %1424 }
 0x30e   : > { %v696_v21 = vsel %vm364_vm7, %v1780_v19, 0.0 }
 0x30f   : > { %694 = vadd.xlane.f32.xlu0 %v693_v20  ;;  %697 = vadd.xlane.f32.xlu1 %v696_v21 }
 0x325   : > { %769 = vrot.lane.b32.xlu0 %v727_v22, %s1513_s4 }
 0x38c   : > { %v680_v23 = vpop.xlane.xlu1 %679 }
 0x38d   : > { %v700_v24 = vadd.f32 1e-16, %v680_v23 }
 0x38f   : > { %1426 = vrcp.f32 %v700_v24 }
 0x390   : > { %v677_v25 = vpop.xlane.xlu0 %676 }
 0x391   : > { %v699_v26 = vadd.f32 1e-16, %v677_v25 }
 0x393   : > { %1428 = vrcp.f32 %v699_v26 }
 0x394   : > { %v683_v30 = vpop.xlane.xlu0 %682  ;;  %v686_v37 = vpop.xlane.xlu1 %685 }
 0x395   : > { %v701_v40 = vadd.f32 1e-16, %v683_v30  ;;  %v702_v41 = vadd.f32 1e-16, %v686_v37 }
 0x397   : > { %1430 = vrcp.f32 %v701_v40 }
 0x398   : > { %1432 = vrcp.f32 %v702_v41  ;;  %v689_v42 = vpop.xlane.xlu0 %688  ;;  %v692_v43 = vpop.xlane.xlu1 %691 }
 0x399   : > { %v1427_v45 = vpop.eup %1426  ;;  %v703_v46 = vadd.f32 1e-16, %v689_v42  ;;  %v704_v47 = vadd.f32 1e-16, %v692_v43 }
 0x39a   : > { %v710_v49 = vmul.f32 %v1427_v45, %v1411_v62 }
 0x39b   : > { %1434 = vrcp.f32 %v703_v46 }
 0x39c   : > { %1436 = vrcp.f32 %v704_v47  ;;  %v695_v31 = vpop.xlane.xlu0 %694  ;;  %v698_v51 = vpop.xlane.xlu1 %697  ;;  %v729_v52 = vmul.f32 %v1685_v59, %v710_v49 }
 0x39d   : > { %v1429_v38 = vpop.eup %1428  ;;  %v705_v53 = vadd.f32 1e-16, %v695_v31  ;;  %v706_v55 = vadd.f32 1e-16, %v698_v51 }
 0x39e   : > { %v708_v56 = vmul.f32 %v1429_v38, %v1413_v9  ;;  %v739_v57 = vsel %vm364_vm7, %v729_v52, 0.0 }
 0x39f   : > { %1438 = vrcp.f32 %v705_v53  ;;  %740 = vadd.xlane.f32.xlu1 %v739_v57 }
 0x3a0   : > { %1440 = vrcp.f32 %v706_v55  ;;  %v723_v60 = vpack.c.bf16 %v710_v49, %v708_v56  ;;  %v770_v61 = vpop.permute.xlu0 %769  ;;  %v728_v48 = vmul.f32 %v708_v56, %v1691_v63 }
 0x3a1   : > { %v1431_v62 = vpop.eup %1430  ;;  %1312 = vmatprep.subr.bf16.mxu0 %v770_v61 }
 0x3a2   : > { %v1433_v1 = vpop.eup %1432  ;;  %v712_v4 = vmul.f32 %v1431_v62, %v1415_v12  ;;  %1313 = vmatpush3.bf16.msra.mxu0 %v770_v61  ;;  %1314 = vmatprep.mubr.msk.bf16.mxu0 %vm364_vm7, %v723_v60  ;;  %v736_v5 = vsel %vm364_vm7, %v728_v48, 0.0 }
 0x3a3   : > { %v714_v6 = vmul.f32 %v1433_v1, %v1417_v28  ;;  %737 = vadd.xlane.f32.xlu1 %v736_v5 }
 0x3a4   : > { %v730_v13 = vmul.f32 %v712_v4, %v1691_v63 }
 0x3a5   : > { %v1435_v7 = vpop.eup %1434  ;;  %v724_v8 = vpack.c.bf16 %v714_v6, %v712_v4  ;;  %v731_v2 = vmul.f32 %v1685_v59, %v714_v6 }
 0x3a6   : > { %v1437_v9 = vpop.eup %1436  ;;  %v716_v10 = vmul.f32 %v1435_v7, %v1770_v15  ;;  %v742_v20 = vsel %vm364_vm7, %v730_v13, 0.0 }
 0x3a7   : > { %1315 = vmatmul.mubr.msk.bf16.vlgmr.msra.gmra.mrb[8].mxu0 %vm364_vm7, %v724_v8  ;;  %v745_v11 = vsel %vm364_vm7, %v731_v2, 0.0  ;;  %v718_v12 = vmul.f32 %v1437_v9, %v1772_v17 }
 0x3a8   : > { %746 = vadd.xlane.f32.xlu1 %v745_v11 }
 0x3a9   : > { %v1439_v14 = vpop.eup %1438  ;;  %v725_v27 = vpack.c.bf16 %v718_v12, %v716_v10  ;;  %v733_v21 = vmul.f32 %v1685_v59, %v718_v12 }
 0x3aa   : > { %v1441_v28 = vpop.eup %1440  ;;  %v720_v18 = vmul.f32 %v1439_v14, %v1778_v16  ;;  %v732_v16 = vmul.f32 %v716_v10, %v1691_v63 }
 0x3ab   : > { %1318 = vmatprep.mubr.msk.bf16.mxu0 %vm364_vm7, %v725_v27  ;;  %v722_v15 = vmul.f32 %v1441_v28, %v1780_v19  ;;  %v751_v24 = vsel %vm364_vm7, %v733_v21, 0.0 }
 0x3ac   : > { %743 = vadd.xlane.f32.xlu1 %v742_v20  ;;  %v734_v22 = vmul.f32 %v720_v18, %v1691_v63  ;;  %v748_v25 = vsel %vm364_vm7, %v732_v16, 0.0 }
 0x3ad   : > { %v726_v17 = vpack.c.bf16 %v722_v15, %v720_v18  ;;  %v735_v19 = vmul.f32 %v1685_v59, %v722_v15 }
 0x3ae   : > { %v754_v23 = vsel %vm364_vm7, %v734_v22, 0.0 }
 0x3af   : > { %1319 = vmatmul.mubr.msk.bf16.gmra.mrb[12].mxu0 %vm364_vm7, %v726_v17  ;;  %755 = vadd.xlane.f32.xlu0 %v754_v23  ;;  %v757_v26 = vsel %vm364_vm7, %v735_v19, 0.0 }
 0x3b0   : > { %752 = vadd.xlane.f32.xlu1 %v751_v24 }
 0x3b4   : > { %749 = vadd.xlane.f32.xlu1 %v748_v25 }
 0x3b8   : > { %758 = vadd.xlane.f32.xlu1 %v757_v26 }
 0x3c9   : > { %871 = vrot.lane.b32.xlu1 %v1638_v36, %s1514_s5 }
 0x3cd   : > { %873 = vrot.lane.b32.xlu1 %v1640_v39, %s1514_s5 }
 0x3d1   : > { %891 = vrot.lane.b32.xlu1 %v1614_v29, %s1514_s5 }
 0x42c   : > { %v741_v63 = vpop.xlane.xlu1 %740 }
 0x42d   : > { %v761_v39 = vmul.f32 %v741_v63, %v1636_v35 }
 0x430   : > { %v738_v30 = vpop.xlane.xlu1 %737 }
 0x431   : > { %v760_v42 = vmul.f32 %v738_v30, %v1636_v35 }
 0x435   : > { %v747_v37 = vpop.xlane.xlu1 %746 }
 0x436   : > { %v763_v46 = vmul.f32 %v747_v37, %v1636_v35 }
 0x439   : > { %v744_v40 = vpop.xlane.xlu1 %743 }
 0x43a   : > { %v762_v59 = vmul.f32 %v744_v40, %v1636_v35 }
 0x43c   : > { %v756_v38 = vpop.xlane.xlu0 %755 }
 0x43d   : > { %v753_v41 = vpop.xlane.xlu1 %752  ;;  %v766_v62 = vmul.f32 %v756_v38, %v1636_v35 }
 0x43e   : > { %v765_v2 = vmul.f32 %v753_v41, %v1636_v35 }
 0x441   : > { %v750_v43 = vpop.xlane.xlu1 %749 }
 0x442   : > { %v764_v4 = vmul.f32 %v750_v43, %v1636_v35 }
 0x445   : > { %v759_v60 = vpop.xlane.xlu1 %758 }
 0x446   : > { %v767_v6 = vmul.f32 %v759_v60, %v1636_v35 }
 0x449   : > { %v872_v27 = vpop.permute.xlu1 %871 }
 0x47a   : > { %v1316_v45 = vpop.f32.mrb[8].mxu0 }
 0x47b   : > { %v827_v36 = vadd.f32 %v1316_v45, %v762_v59  ;;  %v818_v47 = vpop.f32.mrb[9].mxu0 }
 0x47c   : > { %v819_v49 = vadd.f32 %v818_v47, %v760_v42  ;;  %v1317_v31 = vpop.f32.mrb[10].mxu0 }
 0x47d   : > { %v851_v29 = vmul.f32 %v827_v36, %v1627_v33  ;;  %v830_v51 = vadd.f32 %v1317_v31, %v763_v46  ;;  %v821_v52 = vpop.f32.mrb[11].mxu0 }
 0x47e   : > { %v849_v53 = vmul.f32 %v819_v49, %v1622_v32  ;;  %v822_v55 = vadd.f32 %v821_v52, %v761_v39 }
 0x47f   : > { %v858_v56 = vsel %vm429_vm8, %v851_v29, 0.0  ;;  %v852_v57 = vmul.f32 %v830_v51, %v1674_v54 }
 0x480   : > { %v857_v61 = vsel %vm429_vm8, %v849_v53, 0.0  ;;  %v850_v48 = vmul.f32 %v822_v55, %v1665_v50 }
 0x481   : > { %v859_v1 = vadd.f32 %v858_v56, %v857_v61  ;;  %v865_v33 = vsel %vm429_vm8, %v852_v57, 0.0 }
 0x482   : > { %v864_v5 = vsel %vm429_vm8, %v850_v48, 0.0  ;;  %v1320_v32 = vpop.f32.mrb[12].mxu0 }
 0x483   : > { %v866_v7 = vadd.f32 %v865_v33, %v864_v5  ;;  %v843_v8 = vadd.f32 %v1320_v32, %v766_v62  ;;  %v834_v54 = vpop.f32.mrb[13].mxu0 }
 0x484   : > { %v835_v9 = vadd.f32 %v834_v54, %v764_v4  ;;  %v1321_v10 = vpop.f32.mrb[14].mxu0 }
 0x485   : > { %v846_v50 = vadd.f32 %v1321_v10, %v767_v6  ;;  %v837_v11 = vpop.f32.mrb[15].mxu0  ;;  %v855_v12 = vmul.f32 %v843_v8, %v1651_v44 }
 0x486   : > { %v853_v13 = vmul.f32 %v835_v9, %v1632_v34  ;;  %v838_v14 = vadd.f32 %v837_v11, %v765_v2  ;;  %v874_v34 = vpop.permute.xlu1 %873 }
 0x487   : > { %v856_v18 = vmul.f32 %v846_v50, %v1696_v0  ;;  %v862_v21 = vsel %vm429_vm8, %v855_v12, 0.0 }
 0x488   : > { %v860_v28 = vsel %vm429_vm8, %v853_v13, 0.0  ;;  %v854_v20 = vmul.f32 %v838_v14, %v1683_v58 }
 0x489   : > { %v861_v15 = vadd.f32 %v860_v28, %v859_v1  ;;  %v869_v24 = vsel %vm429_vm8, %v856_v18, 0.0 }
 0x48a   : > { %v867_v22 = vsel %vm429_vm8, %v854_v20, 0.0  ;;  %v892_v59 = vpop.permute.xlu1 %891 }
 0x48b   : > { %v863_v17 = vadd.f32 %v862_v21, %v861_v15  ;;  %v868_v23 = vadd.f32 %v867_v22, %v866_v7 }
 0x48d   : > { %v877_v44 = vadd.f32 %v872_v27, %v863_v17  ;;  %v870_v16 = vadd.f32 %v869_v24, %v868_v23 }
 0x48f   : > { %v878_v25 = vadd.f32 %v874_v34, %v870_v16  ;;  %v879_v19 = vsel %vm429_vm8, %v877_v44, 0.0 }
 0x491   : > { %v880_v26 = vsel %vm429_vm8, %v878_v25, 0.0 }
 0x492   : > { %v881_v0 = vadd.f32 %v880_v26, %v879_v19 }
 0x494   : > { %v882_v63 = vrot.slane %v881_v0, 4 }
 0x496   : > { %v883_v58 = vadd.f32 %v882_v63, %v881_v0 }
 0x498   : > { %v884_v30 = vrot.slane %v883_v58, 2 }
 0x49a   : > { %v885_v37 = vadd.f32 %v884_v30, %v883_v58 }
 0x49c   : > { %v886_v40 = vrot.slane %v885_v37, 1 }
 0x49e   : > { %v887_v41 = vadd.f32 %v886_v40, %v885_v37 }
 0x4a0   : > { %v889_v42 = vmul.f32 0.0625, %v887_v41 }
 0x4a2   : > { %v894_v43 = vmul.f32 %v892_v59, %v889_v42 }
 0x4a4   : > { %v898_v45 = vrot.slane %v894_v43, %v1583_v3 }
 0x4a6   : > { %v900_v46 = vsub.f32 %v878_v25, %v898_v45  ;;  %v899_v36 = vsub.f32 %v877_v44, %v898_v45 }
 0x4a8   : > { %917 = vrot.lane.b32.xlu1 %v900_v46, %s1514_s5  ;;  %v902_v47 = vmul.f32 %v900_v46, %v900_v46  ;;  %915 = vrot.lane.b32.xlu0 %v899_v36, %s1514_s5  ;;  %v901_v39 = vmul.f32 %v899_v36, %v899_v36 }
 0x4aa   : > { %v904_v49 = vsel %vm429_vm8, %v902_v47, 0.0  ;;  %v903_v31 = vsel %vm429_vm8, %v901_v39, 0.0 }
 0x4ab   : > { %v905_v29 = vadd.f32 %v904_v49, %v903_v31 }
 0x4ad   : > { %v906_v51 = vrot.slane %v905_v29, 4 }
 0x4af   : > { %v907_v52 = vadd.f32 %v906_v51, %v905_v29 }
 0x4b1   : > { %v908_v38 = vrot.slane %v907_v52, 2 }
 0x4b3   : > { %v909_v53 = vadd.f32 %v908_v38, %v907_v52 }
 0x4b5   : > { %v910_v55 = vrot.slane %v909_v53, 1 }
 0x4b7   : > { %v911_v56 = vadd.f32 %v910_v55, %v909_v53 }
 0x4b9   : > { %v912_v3 = vmul.f32 0.0625, %v911_v56 }
 0x4bb   : > { %v923_v57 = vadd.f32 1e-05, %v912_v3 }
 0x4bd   : > { %1442 = vrsqrt.f32 %v923_v57 }
 0x4c7   : > { %v1443_v60 = vpop.eup %1442 }
 0x4c8   : > { %926 = vrot.lane.b32.xlu1 %v1443_v60, %s1514_s5 }
 0x4cc   : > { %932 = vrot.lane.b32.xlu1 %v1636_v35, %s1512_s23 }
 0x51a   : > { %v918_v61 = vpop.permute.xlu1 %917  ;;  %v916_v48 = vpop.permute.xlu0 %915 }
 0x51b   : > { %v921_v1 = vmul.f32 %v916_v48, %v1636_v35  ;;  %v922_v33 = vmul.f32 %v918_v61, %v1636_v35 }
 0x53a   : > { %v927_v62 = vpop.permute.xlu1 %926 }
 0x53b   : > { %v929_v4 = vmul.f32 %v927_v62, %v921_v1  ;;  %v930_v32 = vmul.f32 %v927_v62, %v922_v33 }
 0x53e   : > { %v933_v5 = vpop.permute.xlu1 %932 }
 0x53f   : > { %v935_v6 = vadd.f32 %v933_v5, %v929_v4  ;;  %v936_v7 = vadd.f32 %v933_v5, %v930_v32 }
 0x541   : > { %v937_v8 = vmax.f32 %v935_v6, 0.0  ;;  %v938_v54 = vmax.f32 %v936_v7, 0.0 }
 0x543   : > { %941 = vrot.lane.b32.xlu1 %v937_v8, %s1512_s23 }
 0x547   : > { %943 = vrot.lane.b32.xlu1 %v938_v54, %s1512_s23  ;;  %s1139_s23 = sshll.u32 %s136_s22, 4  ;;  %s1875_s23 = int_to_ptr.vmem [resolvable:$true] %s1139_s23 }
 0x548   : > { %s1446_s27 = scalar_lea.vmem %s1875_s23, 512  ;;  %p1453_p0 = scmp.lt.s32.totalorder %s1875_s23, %s1451_s29 }
 0x549   : > { %p1447_p11 = scmp.ne.s32.totalorder %s1875_s23, %s1446_s27  ;;  %p1454_p1 = scmp.lt.s32.totalorder %s1452_s30, %s1446_s27 }
 0x54b   : > { %p1448_p12 = pnand %p1447_p11, %p1571_p5  ;;  %p1455_p2 = por %p1454_p1, %p1453_p0 }
 0x54d   : > { %p1449_p13 = pneg %p1448_p12 }
 0x54f   : > { %p1456_p3 = pnand %p1455_p2, %p1449_p13 }
 0x5b5   : > { %v942_v2 = vpop.permute.xlu1 %941 }
 0x5b6   : > { %947 = vxpose.xlu1.b32.start [1/2] (short) (narrow) %v942_v2, 32 }
 0x5b9   : > { %v944_v9 = vpop.permute.xlu1 %943 }
 0x5ba   : > { %v1350_v10 = vpack.c.bf16 %v944_v9, %v942_v2  ;;  %948 = vxpose.xlu1.b32.end [2/2] (short) (narrow) %v944_v9, 32 }
 0x5bc   : > { %1351 = vmatprep.subr.bf16.mxu1 %v1350_v10 }
 0x5bd   : > { %1353 = vmatpush3.bf16.msra.mxu1 %v1350_v10 }
 0x636   : > { %v963_v50 = vpop.trf.xlu1 }
 0x637   : > { %1326 = vmatprep.mubr.msk.f32.mxu1 %vm364_vm7, %v963_v50 }
 0x63a   : > { %v964_v35 = vpop.trf.xlu1 }
 0x63b   : > { %1327 = vmatmul.mubr.msk.f32.vlgmr.msra.gmra.mrb[10].mxu1 %vm364_vm7, %v964_v35 }
 0x63e   : > { %v965_v11 = vpop.trf.xlu1 }
 0x63f   : > { %1329 = vmatprep.mubr.msk.f32.mxu1 %vm364_vm7, %v965_v11 }
 0x642   : > { %v966_v12 = vpop.trf.xlu1 }
 0x643   : > { %1330 = vmatmul.mubr.msk.f32.gmra.mrb[12].mxu1 %vm364_vm7, %v966_v12 }
 0x70e   : > { %v1328_v13 = vpop.f32.mrb[10].mxu1 }
 0x70f   : > { %v1077_v14 = vsel %vm429_vm8, %v1328_v13, inf  ;;  %v1093_v27 = vsel %vm429_vm8, %v1328_v13, -inf  ;;  %v1057_v28 = vpop.f32.mrb[11].mxu1 }
 0x710   : > { %v1076_v18 = vsel %vm429_vm8, %v1057_v28, inf  ;;  %v1092_v20 = vsel %vm429_vm8, %v1057_v28, -inf }
 0x711   : > { %v1080_v15 = vmin.f32 %v1076_v18, %v1077_v14  ;;  %v1096_v21 = vmax.f32 %v1092_v20, %v1093_v27 }
 0x716   : > { %v1331_v22 = vpop.f32.mrb[12].mxu1 }
 0x717   : > { %v1079_v17 = vsel %vm429_vm8, %v1331_v22, inf  ;;  %v1095_v23 = vsel %vm429_vm8, %v1331_v22, -inf  ;;  %v1067_v24 = vpop.f32.mrb[13].mxu1 }
 0x718   : > { %v1078_v44 = vsel %vm429_vm8, %v1067_v24, inf  ;;  %v1094_v16 = vsel %vm429_vm8, %v1067_v24, -inf }
 0x719   : > { %v1081_v34 = vmin.f32 %v1078_v44, %v1079_v17  ;;  %v1097_v25 = vmax.f32 %v1094_v16, %v1095_v23 }
 0x71b   : > { %v1082_v19 = vmin.f32 %v1080_v15, %v1081_v34  ;;  %v1098_v26 = vmax.f32 %v1096_v21, %v1097_v25 }
 0x71d   : > { %1083 = vmin.xlane.f32.xlu0 %v1082_v19 }
 0x721   : > { %1099 = vmax.xlane.f32.xlu0 %v1098_v26 }
 0x7aa   : > { %v1084_v0 = vpop.xlane.xlu0 %1083 }
 0x7ab   : > { %v1085_v63 = vrot.slane %v1084_v0, 4 }
 0x7ad   : > { %v1086_v58 = vmin.f32 %v1084_v0, %v1085_v63 }
 0x7ae   : > { %v1100_v30 = vpop.xlane.xlu0 %1099 }
 0x7af   : > { %v1087_v37 = vrot.slane %v1086_v58, 2  ;;  %v1101_v40 = vrot.slane %v1100_v30, 4 }
 0x7b1   : > { %v1102_v41 = vmax.f32 %v1100_v30, %v1101_v40  ;;  %v1088_v59 = vmin.f32 %v1086_v58, %v1087_v37 }
 0x7b3   : > { %v1103_v42 = vrot.slane %v1102_v41, 2  ;;  %v1089_v43 = vrot.slane %v1088_v59, 1 }
 0x7b5   : > { %v1104_v45 = vmax.f32 %v1102_v41, %v1103_v42  ;;  %v1090_v46 = vmin.f32 %v1088_v59, %v1089_v43 }
 0x7b7   : > { %1355 = vpush %v1090_v46  ;;  %v1105_v36 = vrot.slane %v1104_v45, 1 }
 0x7b9   : > { %v1106_v47 = vmax.f32 %v1104_v45, %v1105_v36 }
 0x7bb   : > { %1357 = vpush %v1106_v47 }
 0x7e8   : > { %s1356_s6 = spop %1355 }
 0x7e9   : > { %v1108_v49 = vstv %s1356_s6 }
 0x7ea   : > { %v1109_v31 = vsub.f32 %v1057_v28, %v1108_v49  ;;  %v1110_v29 = vsub.f32 %v1328_v13, %v1108_v49  ;;  %v1111_v51 = vsub.f32 %v1067_v24, %v1108_v49  ;;  %v1112_v52 = vsub.f32 %v1331_v22, %v1108_v49 }
 0x7ec   : > { %s1358_s7 = spop %1357 }
 0x7ed   : > { %s1113_s8 = ssub.f32 %s1358_s7, %s1356_s6 }
 0x7ef   : > { %s1114_s14 = sadd.f32 1e-08, %s1113_s8 }
 0x7f1   : > { %v1115_v39 = vstv %s1114_s14 }
 0x7f2   : > { %1444 = vrcp.f32 %v1115_v39 }
 0x7fc   : > { %v1445_v38 = vpop.eup %1444 }
 0x7fd   : > { %v1117_v53 = vmul.f32 %v1445_v38, %v1109_v31  ;;  %v1118_v55 = vmul.f32 %v1445_v38, %v1110_v29  ;;  %v1119_v56 = vmul.f32 %v1445_v38, %v1111_v51  ;;  %v1120_v3 = vmul.f32 %v1445_v38, %v1112_v52 }
 0x7ff   : > { %1121 = vst.msk [vmem:[%s136_s22] sm:$0xff] %vm429_vm8, %v1117_v53  ;;  %1122 = vst.msk [vmem:[%s136_s22 + $0x8] sm:$0xff] %vm429_vm8, %v1118_v55 }
 0x800   : > { %1123 = vst.msk [vmem:[%s136_s22 + $0x10] sm:$0xff] %vm429_vm8, %v1119_v56  ;;  %1124 = vst.msk [vmem:[%s136_s22 + $0x18] sm:$0xff] %vm429_vm8, %v1120_v3 }
 0x801   : > { %1459 = shalt.err (!%p1456_p3)
}
 0x802   : > { %s1460_s3 = scalar_lea.hbm %s1873_s26, 512  ;;  %s1464_s6 = scalar_lea.hbm %s1924_s2, 4096 }
 0x803   : > { %p1461_p4 = scmp.ne.s32.totalorder %s1873_s26, %s1460_s3  ;;  %p1465_p9 = scmp.lt.u32.totalorder %s1873_s26, %s1924_s2 }
 0x804   : > { %p1466_p10 = scmp.lt.u32.totalorder %s1464_s6, %s1460_s3  ;;  %p1468_p12 = scmp.lt.u32.totalorder %s1460_s3, %s1873_s26 }
 0x805   : > { %p1462_p7 = pnand %p1461_p4, %p1571_p5 }
 0x806   : > { %p1467_p11 = por %p1466_p10, %p1465_p9 }
 0x807   : > { %p1463_p8 = pneg %p1462_p7 }
 0x808   : > { %p1469_p13 = por %p1468_p12, %p1467_p11 }
 0x80a   : > { %p1470_p0 = pnand %p1469_p13, %p1463_p8 }
 0x80c   : > { %1473 = shalt.err (!%p1470_p0)
}
 0x80d   : > { %s1516_s14 = smov 128   ;;  %s1517_s16 = smov 8  }
 0x80e   : > { %1359 = dma.vmem_to_hbm [thread:$0]  (%p1571_p5), %s1875_s23, 512, %s1873_s26, %s1881_s13, %s1516_s14, %s1516_s14, %s1517_s16  }
 0x80f PF: > { %p1365_p1 = scmp.ge.s32.totalorder %s1508_s12, 2  ;;  %s1154_s17 = sand.u32 1, %s1496_s9  }
 0x810   : > { %s1155_s21 = scalar_lea.sflag [#allocation3], %s1154_s17 }
 0x811   : > { %p1362_p2 = pnand %p1365_p1, %p1575_p6 }
 0x813   : > { %1491 = dma.done.wait (!%p1362_p2), %s1155_s21, 512  }
 0x814   : > { %1493 = vsyncadd (!%p1362_p2), %s1155_s21, 4294966784  ;;  %p12_p3 = scmp.ge.s32.totalorder %s1558_s15, 10   ;;  %s1927_s9 = smov %s1500_s10 }
 0x815   : > { %s1928_s10 = smov %s1504_s11  ;;  %s1929_s11 = smov %s1569_s18 }
 0x816   : > { %s1930_s12 = smov %s1558_s15  ;;  %14 = sbr.rel (!%p12_p3) target bundleno = 3 (0x3), region = 63 }
 0x81d   :  { %1160 = vsyncpa [#allocation3], 1 }
 0x81e   :  { %1162 = vsyncpa [#allocation3 + $0x1], 1 }

</bundles_post_ra>
